<compile_context>
chip_gen: v5e
topology: v5e:2x2
jax: 0.10.0
libtpu: 0.0.40
codegen_flags: <defaults>
</compile_context>

<pallas_src>
import jax
import jax.numpy as jnp
from jax.experimental import pallas as pl
from jax.experimental.pallas import tpu as pltpu


def _get_mask(sampled, total):
    """Multi-hot mask, mirroring nni's _get_mask (plain Python list of bools)."""
    assert isinstance(sampled, (int, list, tuple)), (
        "PathSamplingLayerChoice.sampled must be a static Python int or list "
        f"of ints (got {type(sampled)}); traced/ndarray values would silently "
        "produce a wrong mask.")
    return [(i == sampled) or (isinstance(sampled, (list, tuple)) and i in sampled)
            for i in range(total)]


def _round_up(x, m):
    return -(-x // m) * m


def _path_choice_matmul_kernel(w_ref, x_ref, o_ref):
    """One lane-chunk of the combined conv per grid step.

    w_ref: [Cout_pad, K_pad]    bf16  mask-combined weights (+ bias column)
    x_ref: [K_pad, LANE_BLOCK]  bf16  im2col columns (+ ones row); lane = flat (n,h,w)
    o_ref: [Cout_pad, LANE_BLOCK]     output chunk
    """
    o_ref[...] = jnp.dot(w_ref[...], x_ref[...],
                         preferred_element_type=jnp.float32).astype(o_ref.dtype)


def path_sampling_layer_choice(x_nchw, weights, biases, sampled,
                               out_dtype=jnp.float32):
    """weights: [num_ops, Cout, Cin, KH, KW] (per-op PyTorch OIHW)
       biases : [num_ops, Cout]
       sampled: static int or list[int]  (PathSamplingLayerChoice.sampled)
    """
    assert sampled is not None, 'At least one path needs to be sampled before fprop.'
    num_ops, Cout, Cin, KH, KW = weights.shape
    mask = _get_mask(sampled, num_ops)
    idxs = [i for i, m in enumerate(mask) if m]
    assert idxs, 'At least one path needs to be sampled before fprop.'

    # Linearity of the candidate convs: sum_i (conv(x, W_i) + b_i)
    #   == conv(x, sum_i W_i) + sum_i b_i.  Only sampled params are touched
    # (static indexing -> slices, no gather), so unsampled ops cost nothing.
    w_comb = weights[idxs[0]]
    b_comb = biases[idxs[0]]
    for i in idxs[1:]:
        w_comb = w_comb + weights[i]
        b_comb = b_comb + biases[i]

    N, Cx, H, W = x_nchw.shape
    assert Cx == Cin
    ph, pw = KH // 2, KW // 2
    HW = H * W
    K = KH * KW * Cin

    # --- padded problem sizes (hardware tiles) -------------------------------
    K_pad = _round_up(K + 1, 16)          # +1 bias row; bf16 sublane pack = 16
    Cout_pad = _round_up(Cout, 8)         # f32 output sublane = 8
    L = N * HW                            # flat (n, h, w) lane extent
    out_bytes = jnp.dtype(out_dtype).itemsize

    # Lane-chunk grid: prefer >= 2 chunks so both v7x TensorCores get work
    # (no-op on single-TC v5e/v6e); keep chunks as wide as possible to
    # amortize per-step overhead and MXU weight pushes, but split further if a
    # double-buffered block would exceed a conservative VMEM budget that fits
    # every generation (v7x has only 64 MiB physical / 32 MiB scoped default).
    if L >= 256:
        L_pad = _round_up(L, 256)
        num_steps, lane_block = 2, L_pad // 2
    else:
        L_pad = _round_up(L, 128)
        num_steps, lane_block = 1, L_pad
    vmem_budget = 16 * 1024 * 1024
    while (lane_block % 256 == 0 and
           2 * lane_block * (K_pad * 2 + Cout_pad * out_bytes) > vmem_budget):
        num_steps *= 2
        lane_block //= 2

    # --- wrapper glue (plain XLA): SAME pad + im2col, bias fold, padding -----
    x_pad = jnp.pad(x_nchw, ((0, 0), (0, 0), (ph, ph), (pw, pw)))
    shifts = [x_pad[:, :, kh:kh + H, kw:kw + W]                  # [N, Cin, H, W]
              for kh in range(KH) for kw in range(KW)]
    x_cols = (jnp.stack(shifts, axis=1)                          # [N, KH*KW, Cin, H, W]
              .reshape(N, K, HW)
              .transpose(1, 0, 2)                                # [K, N, HW]
              .reshape(K, L))                                    # lane = flat (n,h,w)
    ones_row = jnp.ones((1, L), dtype=x_cols.dtype)              # bias row
    x_mat = jnp.concatenate([x_cols, ones_row], axis=0)          # [K+1, L]
    x_mat = jnp.pad(x_mat, ((0, K_pad - (K + 1)), (0, L_pad - L))
                    ).astype(jnp.bfloat16)                       # [K_pad, L_pad]

    w_flat = jnp.transpose(w_comb, (0, 2, 3, 1)).reshape(Cout, K)     # (kh,kw,cin) order
    w_aug = jnp.concatenate([w_flat, b_comb.reshape(Cout, 1)], axis=1)  # [Cout, K+1]
    w_mat = jnp.pad(w_aug, ((0, Cout_pad - Cout), (0, K_pad - (K + 1)))
                    ).astype(jnp.bfloat16)                       # [Cout_pad, K_pad]

    bytes_accessed = int(x_mat.size * 2 + w_mat.size * 2
                         + Cout_pad * L_pad * out_bytes)

    # Activation stream: deepen pipelining only when there are enough steps for
    # it to matter (cheap latency insurance on v5e); weights stay resident.
    x_spec = pl.BlockSpec((K_pad, lane_block), lambda g: (0, g))
    if num_steps >= 4:
        x_spec = pl.BlockSpec((K_pad, lane_block), lambda g: (0, g),
                              pipeline_mode=pl.Buffered(3))

    out_flat = pl.pallas_call(
        _path_choice_matmul_kernel,
        out_shape=jax.ShapeDtypeStruct((Cout_pad, L_pad), out_dtype),
        grid=(num_steps,),
        in_specs=[
            pl.BlockSpec((Cout_pad, K_pad), lambda g: (0, 0)),   # resident weights+bias
            x_spec,                                              # lane chunk of columns
        ],
        out_specs=pl.BlockSpec((Cout_pad, lane_block), lambda g: (0, g)),
        compiler_params=pltpu.CompilerParams(
            dimension_semantics=("parallel",)),                  # shard chunks across TCs
        cost_estimate=pl.CostEstimate(
            flops=2 * Cout_pad * K_pad * L_pad,
            transcendentals=0,
            bytes_accessed=bytes_accessed),
    )(w_mat, x_mat)

    # Un-pad and restore NCHW: (Cout, N*HW) -> (N, Cout, H, W).
    out = out_flat[:Cout, :L].reshape(Cout, N, HW).transpose(1, 0, 2)
    return out.reshape(N, Cout, H, W)


def _reference_forward(x_nchw, weights, biases, sampled):
    """Pure-JAX reference mirroring the PyTorch module semantics (f32)."""
    idxs = sampled if isinstance(sampled, (list, tuple)) else [sampled]
    N, _, H, W = x_nchw.shape
    Cout = weights.shape[1]
    out = jnp.zeros((N, Cout, H, W), jnp.float32)
    for i in idxs:
        y = jax.lax.conv_general_dilated(
            x_nchw, weights[i], window_strides=(1, 1), padding='SAME',
            dimension_numbers=('NCHW', 'OIHW', 'NCHW'))
        out = out + y + biases[i][None, :, None, None]
    return out


if __name__ == "__main__":
    key = jax.random.PRNGKey(0)
    N, C, H, W = 2, 4, 16, 16
    num_ops, KH, KW = 3, 3, 3

    kx, kw_, kb = jax.random.split(key, 3)
    x = jax.random.normal(kx, (N, C, H, W), dtype=jnp.float32)
    # Deterministic synthetic parameters for the num_ops Conv2d(C, C, 3) candidates.
    weights = 0.1 * jax.random.normal(kw_, (num_ops, C, C, KH, KW), dtype=jnp.float32)
    biases = 0.1 * jax.random.normal(kb, (num_ops, C), dtype=jnp.float32)

    # Multi-path sampling -> outputs are summed.
    sampled = [0, 2]
    out = jax.block_until_ready(path_sampling_layer_choice(x, weights, biases, sampled))
    ref = _reference_forward(x, weights, biases, sampled)
    assert out.shape == (N, C, H, W)
    # Loose tolerance: kernel matmul operands are bf16 (accumulation is f32).
    assert jnp.allclose(out, ref, atol=5e-2, rtol=5e-2), "mismatch vs reference (multi)"

    # Single-path (int) sampling also works.
    out1 = jax.block_until_ready(path_sampling_layer_choice(x, weights, biases, 1))
    ref1 = _reference_forward(x, weights, biases, 1)
    assert jnp.allclose(out1, ref1, atol=5e-2, rtol=5e-2), "mismatch vs reference (single)"

    print("KERNEL_OK")
</pallas_src>

<mosaic_0001>
module attributes {stable_mosaic.version = 11 : i64} {
  func.func @_path_choice_matmul_kernel(%arg0: i32, %arg1: memref<8x48xbf16, #tpu.memory_space<vmem>>, %arg2: memref<48x256xbf16, #tpu.memory_space<vmem>>, %arg3: memref<8x256xf32, #tpu.memory_space<vmem>>) attributes {dimension_semantics = [#tpu.dimension_semantics<parallel>], iteration_bounds = array<i64: 2>, scalar_prefetch = 0 : i64, scratch_operands = 0 : i64, tpu.core_type = #tpu.core_type<tc>, window_params = [{pipeline_mode = #tpu.pipeline_mode<synchronous>, transform_indices = @transform_0, window_bounds = array<i64: 8, 48>}, {transform_indices = @transform_1, window_bounds = array<i64: 48, 256>}, {transform_indices = @transform_2, window_bounds = array<i64: 8, 256>}]} {
    %c0 = arith.constant 0 : index
    %c0_0 = arith.constant 0 : index
    %0 = vector.load %arg1[%c0, %c0_0] : memref<8x48xbf16, #tpu.memory_space<vmem>>, vector<8x48xbf16>
    %c0_1 = arith.constant 0 : index
    %c0_2 = arith.constant 0 : index
    %1 = vector.load %arg2[%c0_1, %c0_2] : memref<48x256xbf16, #tpu.memory_space<vmem>>, vector<48x256xbf16>
    %cst = arith.constant dense<0.000000e+00> : vector<8x256xf32>
    %2 = tpu.matmul %0, %1, %cst {dimension_numbers = #tpu.dot_dimension_numbers<[1], [0], [0], [1], [0, 0, 1, 1], [], []>} : vector<8x48xbf16>, vector<48x256xbf16>, vector<8x256xf32> -> vector<8x256xf32>
    %c0_3 = arith.constant 0 : index
    %c0_4 = arith.constant 0 : index
    %3 = vector.load %arg3[%c0_3, %c0_4] : memref<8x256xf32, #tpu.memory_space<vmem>>, vector<8x256xf32>
    tpu.vector_store %arg3[%c0_3, %c0_4], %2 {strides = array<i32>} : memref<8x256xf32, #tpu.memory_space<vmem>>, vector<8x256xf32>,
    return
  }
  func.func @transform_0(%arg0: i32) -> (i32, i32) {
    %c0_i32 = arith.constant 0 : i32
    %c0_i32_0 = arith.constant 0 : i32
    %c0_i32_1 = arith.constant 0 : i32
    return %c0_i32, %c0_i32_0 : i32, i32
  }
  func.func @transform_1(%arg0: i32) -> (i32, i32) {
    %c0_i32 = arith.constant 0 : i32
    %c0_i32_0 = arith.constant 0 : i32
    return %c0_i32, %arg0 : i32, i32
  }
  func.func @transform_2(%arg0: i32) -> (i32, i32) {
    %c0_i32 = arith.constant 0 : i32
    %c0_i32_0 = arith.constant 0 : i32
    return %c0_i32, %arg0 : i32, i32
  }
}

</mosaic_0001>

<bundles_post_ra>
// kernel: tpu_custom_call.1
= control target key start
LH: loop header
LB: loop body
LE: loop exit
PB: predicated region body
PF: predicated region fallthrough
CT: control target
= control target key end

     0   :  { %7 = vsyncpa [#allocation3], 0  ;;  %s754_s0 = inlined_call_operand.hbm [shape: bf16[8,48], index: 0, kind: input, shape index: {}]   ;;  %s755_s1 = inlined_call_operand.hbm [shape: bf16[48,512], index: 1, kind: input, shape index: {}]   ;;  %s756_s2 = inlined_call_operand.hbm [shape: f32[8,512], index: 2, kind: output, shape index: {}]  }
   0x1   :  { %8 = vsyncpa [#allocation6], 0 }
   0x2   :  { %10 = vsyncpa [#allocation6 + $0x1], 0 }
   0x3   :  { %11 = vsyncpa [#allocation4], 0 }
   0x4   :  { %13 = vsyncpa [#allocation4 + $0x1], 0  ;;  %s611_s9 = smov 0   ;;  %s613_s10 = smov 0  }
   0x5   :  { %s615_s11 = smov 0   ;;  %s617_s12 = smov 0  }
   0x6 LB: > { %s632_s13 = sadd.s32 4294967295, %s590_s12   ;;  %s350_s14 = sadd.s32 4294967294, %s590_s12   ;;  %s590_s12 = sphi %s617_s12, %s767_s12   ;;  %s586_s11 = sphi %s615_s11, %s766_s11   ;;  %s582_s10 = sphi %s613_s10, %s765_s10   ;;  %s578_s9 = sphi %s611_s9, %s764_s9  }
   0x7   : > { %s636_s15 = sadd.s32 1, %s590_s12   ;;  %s47_s16 = sadd.s32 1, %s586_s11 }
   0x8   : > { %s44_s17 = ssub.s32 %s590_s12, %s636_s15  ;;  %p54_p0 = scmp.ne.s32.totalorder %s586_s11, %s582_s10 }
   0x9   : > { %p45_p1 = scmp.eq.s32.totalorder %s44_s17, 0  ;;  %p55_p2 = scmp.eq.s32.totalorder %s590_s12, 0 }
   0xa   : > { %p60_p3 = scmp.ne.s32.totalorder %s582_s10, %s578_s9  ;;  %p61_p4 = scmp.eq.s32.totalorder %s632_s13, 0 }
   0xb   : > { %s648_s18 = scalar_select %p45_p1, %s586_s11, %s47_s16  }
   0xc   : > { %p650_p5 = por %p55_p2, %p54_p0  ;;  %p656_p6 = por %p61_p4, %p60_p3 }
   0xd   : > { %p84_p7 = scmp.eq.s32.totalorder %s632_s13, 1  ;;  %p90_p8 = scmp.eq.s32.totalorder %s350_s14, 1 }
   0xe   : > { %p351_p9 = scmp.ge.s32.totalorder %s590_s12, 1  ;;  %p97_p10 = scmp.lt.s32.totalorder %s590_s12, 3 }
   0xf   : > { %p663_p11 = por %p84_p7, %p54_p0  ;;  %p667_p12 = por %p90_p8, %p60_p3 }
  0x10   : > { %p671_p13 = pnand %p351_p9, %p97_p10  ;;  %s109_s26 = sshll.u32 %s754_s0, 4  ;;  %s110_s26 = int_to_ptr.hbm [resolvable:$true] %s109_s26 }
  0x11   : > { %s592_s27 = smov [#allocation2]   ;;  %p421_p3 = scmp.lt.s32.totalorder %s590_s12, 2 }
  0x12   : > { %p408_p1 = pneg %p671_p13  ;;  %s111_s28 = sshll.u32 %s592_s27, 4  ;;  %s112_s28 = int_to_ptr.vmem [resolvable:$true] %s111_s28 }
  0x13   : > { %s122_s29 = sand.u32 1, %s586_s11   ;;  %p687_p7 = pnand %p421_p3, %p650_p5 }
  0x14   : > { %p409_p2 = pnand %p408_p1, %p61_p4  ;;  %s398_s3 = smul.u32 48, %s122_s29 }
  0x15   : > { %s390_s4 = sshll.u32 %s590_s12, 3  ;;  %s123_s17 = scalar_lea.sflag [#allocation6], %s122_s29 }
  0x16   : > { %411 = dma.hbm_to_vmem [thread:$0]  (!%p409_p2), %s110_s26, 64, %s112_s28, [#allocation3]  }
  0x17   : > { %s131_s7 = scalar_lea.hbm %s755_s1, %s390_s4  ;;  %s126_s8 = scalar_lea.vmem [#allocation5], %s398_s3 }
  0x18   : > { %s134_s14 = sshll.u32 %s126_s8, 4  ;;  %s132_s16 = sshll.u32 %s131_s7, 4  ;;  %s135_s14 = int_to_ptr.vmem [resolvable:$true] %s134_s14  ;;  %s133_s16 = int_to_ptr.hbm [resolvable:$true] %s132_s16 }
  0x19   : > { %s490_s24 = sshra.s32 %s133_s16, 4  ;;  %p494_p8 = pneg %p687_p7  ;;  %s491_s24 = int_to_ptr.hbm [resolvable:$true] %s490_s24 }
  0x1a   : > { %s492_s19 = scalar_lea.hbm %s491_s24, 48  ;;  %s497_s27 = scalar_lea.hbm %s755_s1, 96 }
  0x1b   : > { %p493_p5 = scmp.ne.s32.totalorder %s491_s24, %s492_s19  ;;  %p498_p1 = scmp.lt.s32.totalorder %s491_s24, %s755_s1 }
  0x1c   : > { %p499_p2 = scmp.lt.s32.totalorder %s497_s27, %s492_s19 }
  0x1d   : > { %p495_p9 = pnand %p494_p8, %p493_p5 }
  0x1e   : > { %p500_p3 = por %p499_p2, %p498_p1 }
  0x1f   : > { %p496_p10 = pneg %p495_p9 }
  0x21   : > { %p501_p0 = pnand %p500_p3, %p496_p10 }
  0x23   : > { %504 = shalt.err (!%p501_p0)
}
  0x24   : > { %s593_s29 = smov 256   ;;  %s594_s3 = smov 128  }
  0x25   : > { %s595_s5 = smov 8   ;;  %146 = sbr.rel (%p671_p13) target bundleno = 197 (0xc5), region = 28 }
  0x26   : > { %415 = dma.hbm_to_vmem [thread:$0]  (!%p687_p7), %s133_s16, 768, %s135_s14, %s123_s17, %s593_s29, %s594_s3, %s595_s5  }
  0x2a   : > { %565 = dma.done.wait (%p61_p4), [#allocation3], 64  }
  0x2b   : > { %567 = vsyncadd (%p61_p4), [#allocation3], 4294967232  ;;  %s712_s6 = sand.u32 1, %s582_s10  }
  0x2c   : > { %s399_s7 = smul.u32 48, %s712_s6  ;;  %s154_s8 = scalar_lea.sflag [#allocation6], %s712_s6 }
  0x2e   : > { %s157_s24 = scalar_lea.vmem [#allocation5], %s399_s7 }
  0x2f   : > { %569 = dma.done.wait (%p656_p6), %s154_s8, 768  }
  0x30   : > { %571 = vsyncadd (%p656_p6), %s154_s8, 4294966528  ;;  %v377_v0 = vld [vmem:[%s157_s24 + $0x20] sm:$0xf]  ;;  %v396_v1 = vld [vmem:[%s157_s24 + $0x24] sm:$0xf0]  ;;  %vm219_vm0 = vcmask 392192  }
  0x31   : > { %v395_v2 = vld [vmem:[%s157_s24 + $0x24] sm:$0xf]  ;;  %v378_v3 = vor.u32 %v396_v1, %v377_v0  ;;  %v379_v4 = vld [vmem:[%s157_s24 + $0x28] sm:$0xf0]  ;;  %v369_v5 = vld [vmem:[%s157_s24 + $0x10] sm:$0xf] }
  0x32   : > { %v394_v6 = vld [vmem:[%s157_s24 + $0x14] sm:$0xf0]  ;;  %v382_v7 = vor.u32 %v395_v2, %v379_v4  ;;  %v393_v8 = vld [vmem:[%s157_s24 + $0x14] sm:$0xf]  ;;  %v371_v9 = vld [vmem:[%s157_s24 + $0x18] sm:$0xf0] }
  0x33   : > { %228 = vmatpush.bf16.msra.mxu0 %v378_v3  ;;  %v370_v10 = vor.u32 %v394_v6, %v369_v5  ;;  %v374_v11 = vor.u32 %v393_v8, %v371_v9  ;;  %v361_v12 = vld [vmem:[%s157_s24] sm:$0xf]  ;;  %v392_v13 = vld [vmem:[%s157_s24 + $0x4] sm:$0xf0]  ;;  %v391_v14 = vld [vmem:[%s157_s24 + $0x4] sm:$0xf] }
  0x34   : > { %241 = vmatpush.bf16.msra.mxu1 %v382_v7  ;;  %v363_v15 = vld [vmem:[%s157_s24 + $0x8] sm:$0xf0]  ;;  %v362_v16 = vor.u32 %v392_v13, %v361_v12  ;;  %s397_s20 = sshll.u32 %s632_s13, 4  ;;  %s358_s23 = sshll.u32 %s712_s6, 4 }
  0x35   : > { %v366_v17 = vor.u32 %v391_v14, %v363_v15  ;;  %v182_v18 = vld [vmem:[#allocation2] sm:$0xf]  ;;  %s263_s16 = scalar_lea.hbm %s756_s2, %s397_s20  ;;  %s178_s17 = scalar_lea.vmem [#allocation7], %s358_s23 }
  0x36   : > { %s265_s19 = sshll.u32 %s178_s17, 4  ;;  %s267_s25 = sshll.u32 %s263_s16, 4  ;;  %s266_s19 = int_to_ptr.vmem [resolvable:$true] %s265_s19  ;;  %s268_s25 = int_to_ptr.hbm [resolvable:$true] %s267_s25 }
  0x37   : > { %229 = vmatpush.bf16.msra.mxu0 %v370_v10  ;;  %s252_s26 = scalar_lea.sflag [#allocation4], %s712_s6  ;;  %s534_s27 = sshra.s32 %s268_s25, 4  ;;  %s535_s27 = int_to_ptr.hbm [resolvable:$true] %s534_s27 }
  0x38   : > { %242 = vmatpush.bf16.msra.mxu1 %v374_v11  ;;  %s536_s28 = scalar_lea.hbm %s535_s27, 16  ;;  %s540_s29 = scalar_lea.hbm %s756_s2, 32 }
  0x39   : > { %p537_p4 = scmp.ne.s32.totalorder %s535_s27, %s536_s28  ;;  %p541_p0 = scmp.lt.s32.totalorder %s535_s27, %s756_s2 }
  0x3a   : > { %p542_p7 = scmp.lt.s32.totalorder %s540_s29, %s536_s28 }
  0x3b   : > { %230 = vmatpush.bf16.msra.mxu0 %v362_v16  ;;  %p538_p6 = pnand %p537_p4, %p663_p11 }
  0x3c   : > { %243 = vmatpush.bf16.msra.mxu1 %v366_v17  ;;  %p543_p5 = por %p542_p7, %p541_p0 }
  0x3d   : > { %p539_p13 = pneg %p538_p6 }
  0x3e   : > { %383 = vmatmul.msk.bf16.vlgmr.msra.gmra.mxu0 %vm219_vm0, %v182_v18 }
  0x3f   : > { %384 = vmatmul.msk.bf16.vlgmr.msra.gmra.mxu1 %vm219_vm0, %v182_v18  ;;  %p544_p8 = pnand %p543_p5, %p539_p13 }
  0xbb   : > { %v232_v19 = vpop.f32.mrf.mxu0 }
  0xbc   : > { %249 = vst [vmem:[%s178_s17] sm:$0xff] %v232_v19  ;;  %v245_v20 = vpop.f32.mrf.mxu1 }
  0xbd   : > { %250 = vst [vmem:[%s178_s17 + $0x8] sm:$0xff] %v245_v20 }
  0xbe   : > { %547 = shalt.err (!%p544_p8)
}
  0xbf   : > { %406 = dma.vmem_to_hbm [thread:$0]  (%p663_p11), %s266_s19, 256, %s268_s25, %s252_s26  }
  0xc3   : > { %v234_v21 = vpop.f32.mrf.mxu0 }
  0xc4   : > { %v247_v22 = vpop.f32.mrf.mxu1 }
  0xc5 PF: > { %s279_s6 = sand.u32 1, %s578_s9   ;;  %p763_p9 = scmp.ge.s32.totalorder %s590_s12, 2 }
  0xc6   : > { %s280_s7 = scalar_lea.sflag [#allocation4], %s279_s6 }
  0xc7   : > { %p417_p10 = pnand %p763_p9, %p667_p12 }
  0xc9   : > { %p418_p1 = pneg %p417_p10 }
  0xcb   : > { %573 = dma.done.wait (%p418_p1), %s280_s7, 256  }
  0xcc   : > { %575 = vsyncadd (%p418_p1), %s280_s7, 4294967040  ;;  %p16_p11 = scmp.ge.s32.totalorder %s636_s15, 4   ;;  %s764_s9 = smov %s582_s10 }
  0xcd   : > { %s765_s10 = smov %s586_s11  ;;  %s766_s11 = smov %s648_s18 }
  0xce   : > { %s767_s12 = smov %s636_s15  ;;  %18 = sbr.rel (!%p16_p11) target bundleno = 6 (0x6), region = 78 }
  0xd3   :  { %286 = vsyncpa [#allocation3], 1 }
  0xd4   :  { %288 = vsyncpa [#allocation3 + $0x1], 1 }
  0xd5   :  { %289 = vsyncpa [#allocation6], 1 }
  0xd6   :  { %291 = vsyncpa [#allocation6 + $0x1], 1 }
  0xd7   :  { %292 = vsyncpa [#allocation4], 1 }
  0xd8   :  { %294 = vsyncpa [#allocation4 + $0x1], 1 }

</bundles_post_ra>
